<compile_context>
chip_gen: v7x
topology: tpu7x:2x2x1
jax: 0.10.0
libtpu: 0.0.40
codegen_flags: <defaults>
</compile_context>

<pallas_src>
import jax
import jax.numpy as jnp
from jax.experimental import pallas as pl
from jax.experimental.pallas import tpu as pltpu


def _upconv_kernel(x_ref, w_ref, b_ref, o_ref):
    """One grid step: a block of `rows` image rows (rows*W pixels).

    x_ref : (rows, W, C_in)        caller dtype (f32/bf16), cast to bf16 here
    w_ref : (2, C_in, 2*C_out)     bf16  per-kh weight slab, last dim = (kw, c)
    b_ref : (1, 2*C_out)           f32   bias tiled over the two kw positions
    o_ref : (rows, 2, W, 2*C_out)  out dtype; row-major == NHWC upsampled layout
    """
    rows, wdim, c_in = x_ref.shape
    n2 = o_ref.shape[-1]
    # In-kernel bf16 cast: avoids a separate XLA cast pass over x in HBM; the
    # VPU has plenty of slack in this HBM-bound kernel.  Free reshape (minor
    # dim unchanged) to present an MXU-friendly 2-D LHS.
    x = x_ref[...].reshape(rows * wdim, c_in).astype(jnp.bfloat16)
    b = b_ref[...]
    # Two static kh matmuls.  (A fused (C_in, 4*C_out) matmul would halve MXU
    # pushes on v6e but the kernel is memory-bound; kept simple.)
    for kh in range(2):
        acc = jnp.dot(x, w_ref[kh], preferred_element_type=jnp.float32)
        acc = acc + b  # f32 epilogue (v5e has no bf16 VPU); cast only at store
        o_ref[:, kh, :, :] = acc.reshape(rows, wdim, n2).astype(o_ref.dtype)


def _pick_vmem_limit_bytes():
    """~75% of per-core VMEM, clamped to [32, 96] MiB (48 MiB v7x-safe fallback)."""
    try:
        cap = int(pltpu.get_tpu_info().vmem_capacity_bytes)
    except Exception:
        cap = 64 << 20  # assume the smallest (v7x) per-core VMEM
    return int(min(max(cap * 3 // 4, 32 << 20), 96 << 20))


def upconv_forward_nhwc(x_nhwc, weight, bias, *, out_dtype=jnp.bfloat16,
                        min_grid_steps=8):
    """ConvTranspose2d(C_in, C_out, kernel_size=2, stride=2), NHWC in / NHWC out.

    x_nhwc : (N, H, W, C_in)
    weight : (C_in, C_out, 2, 2)   (PyTorch ConvTranspose2d layout)
    bias   : (C_out,)
    returns: (N, 2H, 2W, C_out) in `out_dtype` (bf16 by default; f32 MXU accum)
    """
    N, H, W, C_in = x_nhwc.shape
    assert weight.shape[0] == C_in and weight.shape[2:] == (2, 2), weight.shape
    C_out = weight.shape[1]
    n2 = 2 * C_out
    out_dtype = jnp.dtype(out_dtype)

    NH = N * H
    x_rows = x_nhwc.reshape(NH, W, C_in)  # free (contiguous) reshape, no cast

    # --- tile sizing from a VMEM budget -------------------------------------
    vmem_limit = _pick_vmem_limit_bytes()
    block_budget = vmem_limit // 2  # ~24 MiB on v7x, ~48 MiB on v5e/v6e
    x_bytes = jnp.dtype(x_nhwc.dtype).itemsize
    out_bytes = out_dtype.itemsize
    # per-pixel: 2x double-buffered input + 2x double-buffered (4*C_out) output
    # + one f32 (2*C_out) accumulator inside the kernel.
    bytes_per_pixel = 2 * C_in * x_bytes + 2 * 4 * C_out * out_bytes + 2 * C_out * 4
    rows_budget = max(1, block_budget // max(W * bytes_per_pixel, 1))
    # Keep >= min_grid_steps grid steps so the BlockSpec pipeline has work to
    # overlap on each TensorCore (per-step overhead is ~0.35 us, i.e. free).
    rows_cap = max(1, NH // min_grid_steps)
    rows = max(1, min(rows_budget, rows_cap, NH))
    grid = (pl.cdiv(NH, rows),)  # ragged last block handled by Pallas masking

    # --- small operand prep (tiny arrays) -----------------------------------
    # (C_in, C_out, kh, kw) -> (kh, C_in, kw, C_out) -> (2, C_in, 2*C_out)
    w_slab = jnp.transpose(weight, (2, 0, 3, 1)).reshape(2, C_in, n2)
    w_slab = w_slab.astype(jnp.bfloat16)
    b_slab = jnp.tile(bias.astype(jnp.float32), 2).reshape(1, n2)

    out = pl.pallas_call(
        _upconv_kernel,
        out_shape=jax.ShapeDtypeStruct((NH, 2, W, n2), out_dtype),
        grid_spec=pltpu.PrefetchScalarGridSpec(
            num_scalar_prefetch=0,
            grid=grid,
            in_specs=[
                # Streamed, auto-pipelined pixel tiles.  Last two block dims
                # equal the full array dims -> always a legal TPU block.
                pl.BlockSpec((rows, W, C_in), lambda i: (i, 0, 0)),
                # Weight / bias: whole-array operands resident in VMEM.
                pl.BlockSpec(memory_space=pltpu.MemorySpace.VMEM),
                pl.BlockSpec(memory_space=pltpu.MemorySpace.VMEM),
            ],
            out_specs=pl.BlockSpec((rows, 2, W, n2), lambda i: (i, 0, 0, 0)),
        ),
        compiler_params=pltpu.CompilerParams(
            dimension_semantics=("parallel",),
            vmem_limit_bytes=vmem_limit,
        ),
    )(x_rows, w_slab, b_slab)

    # Free reshapes: (N*H, kh, W, kw*C_out) row-major == (N, 2H, 2W, C_out).
    return out.reshape(N, H, 2, W, 2, C_out).reshape(N, 2 * H, 2 * W, C_out)


def upconv_forward(x_nchw, weight, bias, *, out_dtype=jnp.bfloat16):
    """PyTorch-layout adapter: NCHW in / NCHW out (matches UpConv.forward).

    In a fully NHWC UNet these two transposes disappear (use
    upconv_forward_nhwc directly); they exist only to match the PyTorch
    module's NCHW interface for the test below.
    """
    x_nhwc = jnp.transpose(x_nchw, (0, 2, 3, 1))
    y_nhwc = upconv_forward_nhwc(x_nhwc, weight, bias, out_dtype=out_dtype)
    return jnp.transpose(y_nhwc, (0, 3, 1, 2))


def _reference_nchw(x_nchw, weight, bias):
    """Pure-JAX f32 reference of ConvTranspose2d(k=2, s=2), NCHW."""
    N, C_in, H, W = x_nchw.shape
    C_out = weight.shape[1]
    y = jnp.einsum("nchw,cokl->nohkwl", x_nchw, weight,
                   precision=jax.lax.Precision.HIGHEST)  # (N, C_out, H, kh, W, kw)
    y = y.reshape(N, C_out, 2 * H, 2 * W)
    return y + bias[None, :, None, None]


if __name__ == "__main__":
    key = jax.random.PRNGKey(0)
    k1, k2, k3 = jax.random.split(key, 3)

    # Smallest real UNet decoder stage: upconv1 = ConvTranspose2d(64, 32, 2, 2).
    N, C_in, C_out, H, W = 2, 64, 32, 16, 16

    x = jax.random.normal(k1, (N, C_in, H, W), dtype=jnp.float32)
    weight = jax.random.normal(k2, (C_in, C_out, 2, 2), dtype=jnp.float32) * 0.1
    bias = jax.random.normal(k3, (C_out,), dtype=jnp.float32) * 0.1

    out = jax.block_until_ready(upconv_forward(x, weight, bias))
    assert out.shape == (N, C_out, 2 * H, 2 * W), out.shape
    assert out.dtype == jnp.bfloat16, out.dtype
    out_f32 = out.astype(jnp.float32)

    # Loose check vs. the exact f32 reference (kernel uses bf16 operands/output).
    ref = _reference_nchw(x, weight, bias)
    assert jnp.allclose(out_f32, ref, atol=6e-2, rtol=6e-2), float(
        jnp.max(jnp.abs(out_f32 - ref)))

    # Tight check vs. a reference computed from the same bf16-rounded operands
    # (isolates the kernel's f32-accumulation + final bf16 store from the
    # bf16 input/weight cast).
    xq = x.astype(jnp.bfloat16).astype(jnp.float32)
    wq = weight.astype(jnp.bfloat16).astype(jnp.float32)
    ref_q = _reference_nchw(xq, wq, bias)
    assert jnp.allclose(out_f32, ref_q, atol=2e-2, rtol=2e-2), float(
        jnp.max(jnp.abs(out_f32 - ref_q)))

    print("KERNEL_OK")
</pallas_src>

<mosaic_0001>
module attributes {stable_mosaic.version = 11 : i64} {
  func.func @_upconv_kernel(%arg0: i32, %arg1: memref<4x16x64xf32, #tpu.memory_space<vmem>>, %arg2: memref<2x64x64xbf16, #tpu.memory_space<vmem>>, %arg3: memref<1x64xf32, #tpu.memory_space<vmem>>, %arg4: memref<4x2x16x64xbf16, #tpu.memory_space<vmem>>) attributes {dimension_semantics = [#tpu.dimension_semantics<parallel>], iteration_bounds = array<i64: 8>, scalar_prefetch = 0 : i64, scratch_operands = 0 : i64, tpu.core_type = #tpu.core_type<tc>, window_params = [{transform_indices = @transform_0, window_bounds = array<i64: 4, 16, 64>}, {pipeline_mode = #tpu.pipeline_mode<synchronous>, transform_indices = @transform_1, window_bounds = array<i64: 2, 64, 64>}, {pipeline_mode = #tpu.pipeline_mode<synchronous>, transform_indices = @transform_2, window_bounds = array<i64: 1, 64>}, {transform_indices = @transform_3, window_bounds = array<i64: 4, 2, 16, 64>}]} {
    %c0 = arith.constant 0 : index
    %c0_0 = arith.constant 0 : index
    %c0_1 = arith.constant 0 : index
    %0 = vector.load %arg1[%c0, %c0_0, %c0_1] : memref<4x16x64xf32, #tpu.memory_space<vmem>>, vector<4x16x64xf32>
    %1 = vector.shape_cast %0 : vector<4x16x64xf32> to vector<64x64xf32>
    %2 = arith.truncf %1 : vector<64x64xf32> to vector<64x64xbf16>
    %c0_2 = arith.constant 0 : index
    %c0_3 = arith.constant 0 : index
    %3 = vector.load %arg3[%c0_2, %c0_3] : memref<1x64xf32, #tpu.memory_space<vmem>>, vector<1x64xf32>
    %c0_4 = arith.constant 0 : index
    %c0_5 = arith.constant 0 : index
    %c0_6 = arith.constant 0 : index
    %4 = vector.load %arg2[%c0_4, %c0_5, %c0_6] : memref<2x64x64xbf16, #tpu.memory_space<vmem>>, vector<1x64x64xbf16>
    %5 = vector.shape_cast %4 : vector<1x64x64xbf16> to vector<64x64xbf16>
    %cst = arith.constant dense<0.000000e+00> : vector<64x64xf32>
    %6 = tpu.matmul %2, %5, %cst {dimension_numbers = #tpu.dot_dimension_numbers<[1], [0], [0], [1], [0, 0, 1, 1], [], []>} : vector<64x64xbf16>, vector<64x64xbf16>, vector<64x64xf32> -> vector<64x64xf32>
    %7 = vector.broadcast %3 : vector<1x64xf32> to vector<64x64xf32>
    %8 = arith.addf %6, %7 : vector<64x64xf32>
    %9 = vector.shape_cast %8 : vector<64x64xf32> to vector<4x16x64xf32>
    %10 = arith.truncf %9 : vector<4x16x64xf32> to vector<4x16x64xbf16>
    %c0_7 = arith.constant 0 : index
    %c0_8 = arith.constant 0 : index
    %c0_9 = arith.constant 0 : index
    %c0_10 = arith.constant 0 : index
    %11 = vector.load %arg4[%c0_7, %c0_8, %c0_9, %c0_10] : memref<4x2x16x64xbf16, #tpu.memory_space<vmem>>, vector<4x1x16x64xbf16>
    %12 = vector.shape_cast %11 : vector<4x1x16x64xbf16> to vector<4x16x64xbf16>
    %13 = vector.shape_cast %10 : vector<4x16x64xbf16> to vector<4x1x16x64xbf16>
    tpu.vector_store %arg4[%c0_7, %c0_8, %c0_9, %c0_10], %13 {strides = array<i32>} : memref<4x2x16x64xbf16, #tpu.memory_space<vmem>>, vector<4x1x16x64xbf16>,
    %c1 = arith.constant 1 : index
    %c0_11 = arith.constant 0 : index
    %c0_12 = arith.constant 0 : index
    %14 = vector.load %arg2[%c1, %c0_11, %c0_12] : memref<2x64x64xbf16, #tpu.memory_space<vmem>>, vector<1x64x64xbf16>
    %15 = vector.shape_cast %14 : vector<1x64x64xbf16> to vector<64x64xbf16>
    %cst_13 = arith.constant dense<0.000000e+00> : vector<64x64xf32>
    %16 = tpu.matmul %2, %15, %cst_13 {dimension_numbers = #tpu.dot_dimension_numbers<[1], [0], [0], [1], [0, 0, 1, 1], [], []>} : vector<64x64xbf16>, vector<64x64xbf16>, vector<64x64xf32> -> vector<64x64xf32>
    %17 = vector.broadcast %3 : vector<1x64xf32> to vector<64x64xf32>
    %18 = arith.addf %16, %17 : vector<64x64xf32>
    %19 = vector.shape_cast %18 : vector<64x64xf32> to vector<4x16x64xf32>
    %20 = arith.truncf %19 : vector<4x16x64xf32> to vector<4x16x64xbf16>
    %c0_14 = arith.constant 0 : index
    %c1_15 = arith.constant 1 : index
    %c0_16 = arith.constant 0 : index
    %c0_17 = arith.constant 0 : index
    %21 = vector.load %arg4[%c0_14, %c1_15, %c0_16, %c0_17] : memref<4x2x16x64xbf16, #tpu.memory_space<vmem>>, vector<4x1x16x64xbf16>
    %22 = vector.shape_cast %21 : vector<4x1x16x64xbf16> to vector<4x16x64xbf16>
    %23 = vector.shape_cast %20 : vector<4x16x64xbf16> to vector<4x1x16x64xbf16>
    tpu.vector_store %arg4[%c0_14, %c1_15, %c0_16, %c0_17], %23 {strides = array<i32>} : memref<4x2x16x64xbf16, #tpu.memory_space<vmem>>, vector<4x1x16x64xbf16>,
    return
  }
  func.func @transform_0(%arg0: i32) -> (i32, i32, i32) {
    %c0_i32 = arith.constant 0 : i32
    %c0_i32_0 = arith.constant 0 : i32
    %c0_i32_1 = arith.constant 0 : i32
    return %arg0, %c0_i32, %c0_i32_0 : i32, i32, i32
  }
  func.func @transform_1(%arg0: i32) -> (i32, i32, i32) {
    %c0_i32 = arith.constant 0 : i32
    %c0_i32_0 = arith.constant 0 : i32
    %c0_i32_1 = arith.constant 0 : i32
    %c0_i32_2 = arith.constant 0 : i32
    return %c0_i32, %c0_i32_0, %c0_i32_1 : i32, i32, i32
  }
  func.func @transform_2(%arg0: i32) -> (i32, i32) {
    %c0_i32 = arith.constant 0 : i32
    %c0_i32_0 = arith.constant 0 : i32
    %c0_i32_1 = arith.constant 0 : i32
    return %c0_i32, %c0_i32_0 : i32, i32
  }
  func.func @transform_3(%arg0: i32) -> (i32, i32, i32, i32) {
    %c0_i32 = arith.constant 0 : i32
    %c0_i32_0 = arith.constant 0 : i32
    %c0_i32_1 = arith.constant 0 : i32
    %c0_i32_2 = arith.constant 0 : i32
    return %arg0, %c0_i32, %c0_i32_0, %c0_i32_1 : i32, i32, i32, i32
  }
}

</mosaic_0001>

<bundles_post_ra>
// kernel: tpu_custom_call.1
= control target key start
LH: loop header
LB: loop body
LE: loop exit
PB: predicated region body
PF: predicated region fallthrough
CT: control target
= control target key end

     0   :  { %8 = vsyncpa [#allocation3], 0  ;;  %s1224_s0 = inlined_call_operand.hbm [shape: f32[32,16,64], index: 0, kind: input, shape index: {}]   ;;  %s1225_s1 = inlined_call_operand.hbm [shape: bf16[2,64,64], index: 1, kind: input, shape index: {}]   ;;  %s1226_s2 = inlined_call_operand.vmem [shape: f32[1,64], index: 2, kind: input, shape index: {}]   ;;  %s1227_s3 = inlined_call_operand.hbm [shape: bf16[32,2,16,64], index: 3, kind: output, shape index: {}]  }
   0x1   :  { %10 = vsyncpa [#allocation3 + $0x1], 0 }
   0x2   :  { %11 = vsyncpa [#allocation6], 0 }
   0x3   :  { %12 = vsyncpa [#allocation4], 0 }
   0x4   :  { %14 = vsyncpa [#allocation4 + $0x1], 0  ;;  %s972_s12 = smov 0   ;;  %s974_s13 = smov 0  }
   0x5   :  { %s976_s14 = smov 0   ;;  %s978_s15 = smov 0  }
   0x6 LB: > { %s993_s16 = sadd.s32 4294967295, %s941_s15   ;;  %s615_s17 = sadd.s32 4294967294, %s941_s15   ;;  %s941_s15 = sphi %s978_s15, %s1246_s15   ;;  %s937_s14 = sphi %s976_s14, %s1245_s14   ;;  %s933_s13 = sphi %s974_s13, %s1244_s13   ;;  %s929_s12 = sphi %s972_s12, %s1243_s12  }
   0x7   : > { %p40_p0 = scmp.ne.s32.totalorder %s933_s13, %s929_s12  ;;  %p1228_p1 = scmp.eq.s32.totalorder %s993_s16, 0 }
   0x8   : > { %p112_p3 = scmp.eq.s32.totalorder %s615_s17, 7  ;;  %p616_p5 = scmp.ge.s32.totalorder %s941_s15, 1 }
   0x9   : > { %p1002_p4 = por %p1228_p1, %p40_p0  ;;  %p119_p7 = scmp.lt.s32.totalorder %s941_s15, 9 }
   0xa   : > { %p1007_p6 = por %p112_p3, %p40_p0  ;;  %s943_s21 = smov [#allocation5]  }
   0xb   : > { %s1231_s18 = scalar_select %p1002_p4, 1, 0 }
   0xc   : > { %s1232_s19 = scalar_select %p1007_p6, 1, 0 }
   0xd   : > { %p1012_p8 = pnand %p616_p5, %p119_p7  ;;  %s131_s22 = sshll.u32 %s943_s21, 4  ;;  %s132_s22 = int_to_ptr.vmem [resolvable:$true] %s131_s22 }
   0xe   : > { %s1025_s24 = sadd.s32 1, %s941_s15   ;;  %s27_s25 = sadd.s32 1, %s937_s14 }
   0xf   : > { %s1233_s20 = scalar_select %p1012_p8, 1, 0 }
  0x10   : > { %p750_p9 = pneg %p1012_p8  ;;  %s24_s26 = ssub.s32 %s941_s15, %s1025_s24 }
  0x11   : > { %s813_s29 = scalar_lea.hbm %s1225_s1, 1024 }
  0x12   : > { %p1020_p10 = pnand %p750_p9, %p1228_p1  ;;  %p814_p11 = scmp.ne.s32.totalorder %s1225_s1, %s813_s29 }
  0x13   : > { %p820_p3 = scmp.lt.u32.totalorder %s813_s29, %s1225_s1 }
  0x14   : > { %p815_p12 = pneg %p1020_p10 }
  0x16   : > { %p816_p13 = pnand %p815_p12, %p814_p11 }
  0x18   : > { %p817_p0 = pneg %p816_p13 }
  0x1a   : > { %p822_p5 = pnand %p820_p3, %p817_p0 }
  0x1c   : > { %825 = shalt.err (!%p822_p5)
}
  0x1d   : > { %s826_s7 = scalar_lea.vmem %s132_s22, 1024  ;;  %p834_p2 = scmp.lt.s32.totalorder %s132_s22, %s132_s22 }
  0x1e   : > { %p827_p7 = scmp.ne.s32.totalorder %s132_s22, %s826_s7  ;;  %p835_p6 = scmp.lt.s32.totalorder %s826_s7, %s826_s7 }
  0x20   : > { %p829_p9 = pnand %p827_p7, %p815_p12  ;;  %p836_p4 = por %p835_p6, %p834_p2 }
  0x22   : > { %p830_p1 = pneg %p829_p9 }
  0x24   : > { %p837_p8 = pnand %p836_p4, %p830_p1 }
  0x26   : > { %840 = shalt.err (!%p837_p8)
}
  0x27   : > { %s944_s8 = smov 64   ;;  %s945_s9 = smov 4  }
  0x28   : > { %753 = dma.hbm_to_vmem [thread:$0]  (!%p1020_p10), %s1225_s1, 1024, %s132_s22, [#allocation6], %s944_s8, %s944_s8, %s945_s9  }
  0x29   : > { %p25_p11 = scmp.eq.s32.totalorder %s24_s26, 0  ;;  %p34_p2 = scmp.ne.s32.totalorder %s937_s14, %s933_s13 }
  0x2a   : > { %p35_p1 = scmp.eq.s32.totalorder %s941_s15, 0  ;;  %p763_p4 = scmp.lt.s32.totalorder %s941_s15, 8 }
  0x2b   : > { %s1051_s17 = scalar_select %p25_p11, %s937_s14, %s27_s25  }
  0x2c   : > { %p36_p6 = por %p35_p1, %p34_p2  ;;  %p1235_p8 = scmp.eq.s32.totalorder %s993_s16, 7 }
  0x2d   : > { %s148_s27 = sand.u32 1, %s937_s14   ;;  %s675_s28 = sshll.u32 %s941_s15, 10 }
  0x2e   : > { %p1055_p12 = por %p1235_p8, %p34_p2  ;;  %s619_s29 = sshll.u32 %s148_s27, 6 }
  0x2f   : > { %s1064_s4 = scalar_lea.hbm %s1224_s0, %s675_s28  ;;  %s152_s22 = scalar_lea.vmem [#allocation2], %s619_s29 }
  0x30   : > { %s160_s25 = sshll.u32 %s152_s22, 4  ;;  %p1066_p10 = pnand %p763_p4, %p36_p6  ;;  %s1070_s25 = int_to_ptr.vmem [resolvable:$true] %s160_s25 }
  0x31   : > { %s1072_s5 = scalar_lea.sflag [#allocation3], %s148_s27  ;;  %s841_s6 = scalar_lea.hbm %s1064_s4, 1024 }
  0x32   : > { %p842_p13 = scmp.ne.s32.totalorder %s1064_s4, %s841_s6  ;;  %p843_p0 = pneg %p1066_p10 }
  0x33   : > { %s846_s9 = scalar_lea.hbm %s1224_s0, 8192  ;;  %p847_p7 = scmp.lt.u32.totalorder %s1064_s4, %s1224_s0 }
  0x34   : > { %p844_p3 = pnand %p843_p0, %p842_p13  ;;  %p848_p9 = scmp.lt.u32.totalorder %s846_s9, %s841_s6 }
  0x35   : > { %p850_p2 = scmp.lt.u32.totalorder %s841_s6, %s1064_s4 }
  0x36   : > { %p845_p5 = pneg %p844_p3  ;;  %p849_p11 = por %p848_p9, %p847_p7 }
  0x38   : > { %p851_p1 = por %p850_p2, %p849_p11 }
  0x3a   : > { %p852_p4 = pnand %p851_p1, %p845_p5 }
  0x3c   : > { %855 = shalt.err (!%p852_p4)
}
  0x3d   : > { %s856_s27 = scalar_lea.vmem %s1070_s25, 1024  ;;  %s946_s28 = smov [#allocation2]  }
  0x3e   : > { %p857_p6 = scmp.ne.s32.totalorder %s1070_s25, %s856_s27  ;;  %s861_s29 = sshll.u32 %s946_s28, 4  ;;  %s862_s29 = int_to_ptr.vmem [resolvable:$false] %s861_s29 }
  0x3f   : > { %s863_s23 = scalar_lea.vmem %s862_s29, 2048  ;;  %p864_p3 = scmp.lt.s32.totalorder %s1070_s25, %s862_s29 }
  0x40   : > { %p859_p8 = pnand %p857_p6, %p843_p0  ;;  %p865_p7 = scmp.lt.s32.totalorder %s863_s23, %s856_s27 }
  0x42   : > { %p860_p13 = pneg %p859_p8  ;;  %p866_p9 = por %p865_p7, %p864_p3 }
  0x44   : > { %p867_p11 = pnand %p866_p9, %p860_p13 }
  0x46   : > { %870 = shalt.err (!%p867_p11)
}
  0x47   : > { %s947_s30 = smov 128   ;;  %s948_s22 = smov 8  }
  0x48   : > { %757 = dma.hbm_to_vmem [thread:$0]  (!%p1066_p10), %s1064_s4, 1024, %s1070_s25, %s1072_s5, %s947_s30, %s947_s30, %s948_s22  }
  0x49   : > { %p1238_p0 = scmp.ne.s32.totalorder %s1233_s20, 0 }
  0x4a   : > { %s1103_s6 = sand.u32 (!%p1238_p0), 1, %s933_s13   ;;  %p1239_p5 = scmp.ne.s32.totalorder (!%p1238_p0), %s1231_s18, 0 }
  0x4b   : > { %172 = sbr.rel (%p1238_p0) target bundleno = 346 (0x15a), region = 32  ;;  %s624_s7 = sshll.u32 (!%p1238_p0), %s1103_s6, 6 }
  0x4c   : > { %s175_s8 = scalar_lea.sflag (!%p1238_p0), [#allocation3], %s1103_s6  ;;  %s1109_s9 = scalar_lea.vmem (!%p1238_p0), [#allocation2], %s624_s7 }
  0x52   : > { %916 = dma.done.wait (%p1239_p5), %s175_s8, 1024  }
  0x53   : > { %918 = vsyncadd (%p1239_p5), %s175_s8, 4294966272  ;;  %p1240_p10 = scmp.eq.s32.totalorder %s993_s16, 0 }
  0x55   : > { %920 = dma.done.wait (%p1240_p10), [#allocation6], 1024   ;;  %p1241_p2 = pmov %p1240_p10 }
  0x56   : > { %v805_v0 = vld [vmem:[#allocation5] sm:$0xff]   ;;  %v807_v2 = vld [vmem:[#allocation5 + $0x8] sm:$0xff]   ;;  %v809_v4 = vld [vmem:[#allocation5 + $0x10] sm:$0xff]   ;;  %vm259_vm0 = vcmask 523264   ;;  %vm369_vm1 = vcmask 519168   ;;  %s1140_s4 = scalar_lea.vmem [#allocation7], %s624_s7 }
  0x57   : > { %922 = vsyncadd (%p1241_p2), [#allocation6], 4294966272  ;;  %v806_v1 = vld [vmem:[#allocation5 + $0x20] sm:$0xff]   ;;  %710 = vmatprep.subr.bf16.mxu0 %v805_v0  ;;  %v808_v3 = vld [vmem:[#allocation5 + $0x28] sm:$0xff]   ;;  %s693_s25 = sshll.u32 %s993_s16, 10  ;;  %s532_s26 = sshll.u32 %s1140_s4, 4  ;;  %s1171_s26 = int_to_ptr.vmem [resolvable:$true] %s532_s26 }
  0x58   : > { %726 = vmatprep.subr.bf16.mxu1 %v806_v1  ;;  %711 = vmatpush3.bf16.msra.mxu0 %v805_v0  ;;  %v810_v5 = vld [vmem:[#allocation5 + $0x30] sm:$0xff]   ;;  %v811_v6 = vld [vmem:[#allocation5 + $0x18] sm:$0xff]   ;;  %v208_v7 = vld [vmem:[%s1109_s9] sm:$0xff]  ;;  %s1169_s10 = scalar_lea.hbm %s1227_s3, %s693_s25  ;;  %s518_s11 = scalar_lea.sflag [#allocation4], %s1103_s6 }
  0x59   : > { %727 = vmatpush3.bf16.msra.mxu1 %v806_v1  ;;  %712 = vmatprep.subr.bf16.mxu0 %v807_v2  ;;  %v209_v8 = vld [vmem:[%s1109_s9 + $0x8] sm:$0xff]  ;;  %v812_v9 = vld [vmem:[#allocation5 + $0x38] sm:$0xff]   ;;  %v210_v11 = vld [vmem:[%s1109_s9 + $0x10] sm:$0xff]  ;;  %s871_s27 = scalar_lea.vmem %s1171_s26, 1024  ;;  %s949_s28 = smov [#allocation7]  }
  0x5a   : > { %728 = vmatprep.subr.bf16.mxu1 %v808_v3  ;;  %v216_v10 = vpack.c.bf16 %v209_v8, %v208_v7  ;;  %v211_v12 = vld [vmem:[%s1109_s9 + $0x18] sm:$0xff]  ;;  %v212_v13 = vld [vmem:[%s1109_s9 + $0x20] sm:$0xff]  ;;  %v213_v14 = vld [vmem:[%s1109_s9 + $0x28] sm:$0xff]  ;;  %p872_p1 = scmp.ne.s32.totalorder %s1171_s26, %s871_s27  ;;  %s875_s29 = sshll.u32 %s949_s28, 4  ;;  %s876_s29 = int_to_ptr.vmem [resolvable:$false] %s875_s29 }
  0x5b   : > { %v217_v15 = vpack.c.bf16 %v211_v12, %v210_v11  ;;  %v218_v16 = vpack.c.bf16 %v213_v14, %v212_v13  ;;  %v214_v17 = vld [vmem:[%s1109_s9 + $0x30] sm:$0xff]  ;;  %v215_v18 = vld [vmem:[%s1109_s9 + $0x38] sm:$0xff]  ;;  %v627_v20 = vld [vmem:[%s1226_s2] ss:$0 sm:$0xff]  ;;  %s877_s23 = scalar_lea.vmem %s876_s29, 2048  ;;  %p878_p8 = scmp.lt.s32.totalorder %s1171_s26, %s876_s29 }
  0x5c   : > { %713 = vmatpush3.bf16.msra.mxu0 %v807_v2  ;;  %718 = vmatprep.mubr.msk.bf16.mxu0 %vm259_vm0, %v216_v10  ;;  %v219_v19 = vpack.c.bf16 %v215_v18, %v214_v17  ;;  %p873_p4 = pnand %p872_p1, %p1055_p12  ;;  %p879_p13 = scmp.lt.s32.totalorder %s877_s23, %s871_s27 }
  0x5d   : > { %729 = vmatpush3.bf16.msra.mxu1 %v808_v3  ;;  %714 = vmatprep.subr.bf16.mxu0 %v809_v4 }
  0x5e   : > { %730 = vmatprep.subr.bf16.mxu1 %v810_v5  ;;  %734 = vmatprep.mubr.msk.bf16.mxu1 %vm259_vm0, %v216_v10  ;;  %p874_p6 = pneg %p873_p4  ;;  %p880_p3 = por %p879_p13, %p878_p8 }
  0x60   : > { %715 = vmatpush3.bf16.msra.mxu0 %v809_v4  ;;  %p881_p7 = pnand %p880_p3, %p874_p6 }
  0x61   : > { %731 = vmatpush3.bf16.msra.mxu1 %v810_v5  ;;  %716 = vmatprep.subr.bf16.mxu0 %v811_v6 }
  0x62   : > { %732 = vmatprep.subr.bf16.mxu1 %v812_v9 }
  0x64   : > { %717 = vmatpush3.bf16.msra.mxu0 %v811_v6 }
  0x65   : > { %733 = vmatpush3.bf16.msra.mxu1 %v812_v9 }
  0x67   : > { %719 = vmatmul.mubr.msk.bf16.vlgmr.msra.gmra.mrb[0].mxu0 %vm259_vm0, %v217_v15 }
  0x68   : > { %735 = vmatmul.mubr.msk.bf16.vlgmr.msra.gmra.mrb[0].mxu1 %vm259_vm0, %v217_v15  ;;  %722 = vmatprep.mubr.msk.bf16.mxu0 %vm259_vm0, %v218_v16 }
  0x69   : > { %738 = vmatprep.mubr.msk.bf16.mxu1 %vm259_vm0, %v218_v16 }
  0x6f   : > { %723 = vmatmul.mubr.msk.bf16.gmra.mrb[4].mxu0 %vm259_vm0, %v219_v19 }
  0x70   : > { %739 = vmatmul.mubr.msk.bf16.gmra.mrb[4].mxu1 %vm259_vm0, %v219_v19 }
 0x13a   : > { %v720_v21 = vpop.f32.mrb[0].mxu0 }
 0x13b   : > { %v315_v22 = vadd.f32 %v720_v21, %v627_v20  ;;  %v736_v23 = vpop.f32.mrb[0].mxu1  ;;  %v306_v24 = vpop.f32.mrb[1].mxu0 }
 0x13c   : > { %v454_v25 = vadd.f32 %v736_v23, %v627_v20  ;;  %v307_v26 = vadd.f32 %v627_v20, %v306_v24  ;;  %v445_v27 = vpop.f32.mrb[1].mxu1  ;;  %v721_v28 = vpop.f32.mrb[2].mxu0 }
 0x13d   : > { %v678_v29 = vpack.c.bf16 %v315_v22, %v315_v22  ;;  %v446_v30 = vadd.f32 %v627_v20, %v445_v27  ;;  %v318_v31 = vadd.f32 %v721_v28, %v627_v20  ;;  %v737_v32 = vpop.f32.mrb[2].mxu1  ;;  %v309_v33 = vpop.f32.mrb[3].mxu0 }
 0x13e   : > { %v686_v34 = vpack.c.bf16 %v454_v25, %v454_v25  ;;  %v676_v35 = vpack.c.bf16 %v307_v26, %v307_v26  ;;  %v457_v36 = vadd.f32 %v737_v32, %v627_v20  ;;  %v310_v37 = vadd.f32 %v627_v20, %v309_v33  ;;  %v448_v38 = vpop.f32.mrb[3].mxu1 }
 0x13f   : > { %372 = vst.msk [vmem:[%s1140_s4 + $0x10] sm:$0xf] %vm369_vm1, %v678_v29  ;;  %v684_v39 = vpack.c.bf16 %v446_v30, %v446_v30  ;;  %v679_v40 = vpack.c.bf16 %v318_v31, %v318_v31  ;;  %v449_v41 = vadd.f32 %v627_v20, %v448_v38 }
 0x140   : > { %662 = vst.msk [vmem:[%s1140_s4 + $0x18] sm:$0xf] %vm369_vm1, %v686_v34  ;;  %370 = vst.msk [vmem:[%s1140_s4] sm:$0xf] %vm369_vm1, %v676_v35  ;;  %v687_v42 = vpack.c.bf16 %v457_v36, %v457_v36  ;;  %v677_v43 = vpack.c.bf16 %v310_v37, %v310_v37 }
 0x141   : > { %660 = vst.msk [vmem:[%s1140_s4 + $0x8] sm:$0xf] %vm369_vm1, %v684_v39  ;;  %373 = vst.msk [vmem:[%s1140_s4 + $0x14] sm:$0xf] %vm369_vm1, %v679_v40  ;;  %v685_v44 = vpack.c.bf16 %v449_v41, %v449_v41 }
 0x142   : > { %663 = vst.msk [vmem:[%s1140_s4 + $0x1c] sm:$0xf] %vm369_vm1, %v687_v42  ;;  %371 = vst.msk [vmem:[%s1140_s4 + $0x4] sm:$0xf] %vm369_vm1, %v677_v43  ;;  %v724_v45 = vpop.f32.mrb[4].mxu0 }
 0x143   : > { %661 = vst.msk [vmem:[%s1140_s4 + $0xc] sm:$0xf] %vm369_vm1, %v685_v44  ;;  %v331_v46 = vadd.f32 %v724_v45, %v627_v20  ;;  %v740_v47 = vpop.f32.mrb[4].mxu1  ;;  %v322_v48 = vpop.f32.mrb[5].mxu0 }
 0x144   : > { %v470_v49 = vadd.f32 %v740_v47, %v627_v20  ;;  %v323_v50 = vadd.f32 %v627_v20, %v322_v48  ;;  %v461_v51 = vpop.f32.mrb[5].mxu1  ;;  %v725_v52 = vpop.f32.mrb[6].mxu0 }
 0x145   : > { %v682_v53 = vpack.c.bf16 %v331_v46, %v331_v46  ;;  %v462_v54 = vadd.f32 %v627_v20, %v461_v51  ;;  %v334_v55 = vadd.f32 %v725_v52, %v627_v20  ;;  %v741_v56 = vpop.f32.mrb[6].mxu1  ;;  %v325_v57 = vpop.f32.mrb[7].mxu0 }
 0x146   : > { %v690_v58 = vpack.c.bf16 %v470_v49, %v470_v49  ;;  %v680_v59 = vpack.c.bf16 %v323_v50, %v323_v50  ;;  %v473_v60 = vadd.f32 %v741_v56, %v627_v20  ;;  %v326_v61 = vadd.f32 %v627_v20, %v325_v57  ;;  %v464_v62 = vpop.f32.mrb[7].mxu1 }
 0x147   : > { %376 = vst.msk [vmem:[%s1140_s4 + $0x30] sm:$0xf] %vm369_vm1, %v682_v53  ;;  %v688_v63 = vpack.c.bf16 %v462_v54, %v462_v54  ;;  %v683_v0 = vpack.c.bf16 %v334_v55, %v334_v55  ;;  %v465_v1 = vadd.f32 %v627_v20, %v464_v62 }
 0x148   : > { %666 = vst.msk [vmem:[%s1140_s4 + $0x38] sm:$0xf] %vm369_vm1, %v690_v58  ;;  %374 = vst.msk [vmem:[%s1140_s4 + $0x20] sm:$0xf] %vm369_vm1, %v680_v59  ;;  %v691_v2 = vpack.c.bf16 %v473_v60, %v473_v60  ;;  %v681_v3 = vpack.c.bf16 %v326_v61, %v326_v61 }
 0x149   : > { %664 = vst.msk [vmem:[%s1140_s4 + $0x28] sm:$0xf] %vm369_vm1, %v688_v63  ;;  %377 = vst.msk [vmem:[%s1140_s4 + $0x34] sm:$0xf] %vm369_vm1, %v683_v0  ;;  %v689_v4 = vpack.c.bf16 %v465_v1, %v465_v1 }
 0x14a   : > { %667 = vst.msk [vmem:[%s1140_s4 + $0x3c] sm:$0xf] %vm369_vm1, %v691_v2  ;;  %375 = vst.msk [vmem:[%s1140_s4 + $0x24] sm:$0xf] %vm369_vm1, %v681_v3 }
 0x14b   : > { %665 = vst.msk [vmem:[%s1140_s4 + $0x2c] sm:$0xf] %vm369_vm1, %v689_v4 }
 0x14c   : > { %884 = shalt.err (!%p881_p7)
}
 0x14d   : > { %s885_s30 = scalar_lea.hbm %s1169_s10, 1024  ;;  %s889_s8 = scalar_lea.hbm %s1227_s3, 8192 }
 0x14e   : > { %p886_p9 = scmp.ne.s32.totalorder %s1169_s10, %s885_s30  ;;  %p890_p5 = scmp.lt.u32.totalorder %s1169_s10, %s1227_s3 }
 0x14f   : > { %p891_p10 = scmp.lt.u32.totalorder %s889_s8, %s885_s30  ;;  %p893_p1 = scmp.lt.u32.totalorder %s885_s30, %s1169_s10 }
 0x150   : > { %p887_p11 = pnand %p886_p9, %p1055_p12 }
 0x151   : > { %p892_p2 = por %p891_p10, %p890_p5 }
 0x152   : > { %p888_p0 = pneg %p887_p11 }
 0x153   : > { %p894_p4 = por %p893_p1, %p892_p2 }
 0x155   : > { %p895_p6 = pnand %p894_p4, %p888_p0 }
 0x157   : > { %898 = shalt.err (!%p895_p6)
}
 0x158   : > { %s950_s20 = smov 64   ;;  %s951_s4 = smov 4  }
 0x159   : > { %748 = dma.vmem_to_hbm [thread:$0]  (%p1055_p12), %s1171_s26, 1024, %s1169_s10, %s518_s11, %s950_s20, %s950_s20, %s951_s4  }
 0x15a PF: > { %p765_p8 = scmp.ge.s32.totalorder %s941_s15, 2  ;;  %s547_s25 = sand.u32 1, %s929_s12  }
 0x15b   : > { %p1242_p13 = scmp.ne.s32.totalorder %s1232_s19, 0  ;;  %s548_s16 = scalar_lea.sflag [#allocation4], %s547_s25 }
 0x15d   : > { %p759_p3 = pnand %p765_p8, %p1242_p13 }
 0x15f   : > { %924 = dma.done.wait (!%p759_p3), %s548_s16, 1024  }
 0x160   : > { %926 = vsyncadd (!%p759_p3), %s548_s16, 4294966272  ;;  %p17_p7 = scmp.ge.s32.totalorder %s1025_s24, 10   ;;  %s1243_s12 = smov %s933_s13 }
 0x161   : > { %s1244_s13 = smov %s937_s14  ;;  %s1245_s14 = smov %s1051_s17 }
 0x162   : > { %s1246_s15 = smov %s1025_s24  ;;  %19 = sbr.rel (!%p17_p7) target bundleno = 6 (0x6), region = 83 }
 0x169   :  { %553 = vsyncpa [#allocation3], 1 }
 0x16a   :  { %555 = vsyncpa [#allocation3 + $0x1], 1 }
 0x16b   :  { %556 = vsyncpa [#allocation6], 1 }
 0x16c   :  { %557 = vsyncpa [#allocation4], 1 }
 0x16d   :  { %559 = vsyncpa [#allocation4 + $0x1], 1 }

</bundles_post_ra>
